<compile_context>
chip_gen: v7x
topology: tpu7x:2x2x1
jax: 0.10.0
libtpu: 0.0.40
codegen_flags: <defaults>
</compile_context>

<pallas_src>
import jax
import jax.numpy as jnp
from jax.experimental import pallas as pl
from jax.experimental.pallas import tpu as pltpu

BN_EPS = 1e-5
LEAKY_SLOPE = 0.2
LANE = 128
SUBLANE = 8


def _round_up(x, m):
    return ((x + m - 1) // m) * m


# --------------------------------------------------------------------------
# Kernel: one batch tile of the full head (BN already folded into W / b).
# --------------------------------------------------------------------------
def clip_head_kernel(text_ref, image_ref,
                     wt_ref, bt_ref, wv_ref, bv_ref,
                     wct_ref, wcv_ref, bc_ref,
                     out_ref):
    # textual branch: (TB, Dp) @ (Dp, Lp) + bias, LeakyReLU  (bf16 MXU, f32 acc)
    t = jnp.dot(text_ref[...].astype(jnp.bfloat16), wt_ref[...],
                preferred_element_type=jnp.float32) + bt_ref[...]
    t = jnp.maximum(t, LEAKY_SLOPE * t)
    # Consume t immediately: acc = t @ Wc[:, :L]^T + bc  (t dead before v exists)
    acc = jnp.dot(t.astype(jnp.bfloat16), wct_ref[...],
                  preferred_element_type=jnp.float32) + bc_ref[...]

    # visual branch
    v = jnp.dot(image_ref[...].astype(jnp.bfloat16), wv_ref[...],
                preferred_element_type=jnp.float32) + bv_ref[...]
    v = jnp.maximum(v, LEAKY_SLOPE * v)

    out_ref[...] = acc + jnp.dot(v.astype(jnp.bfloat16), wcv_ref[...],
                                 preferred_element_type=jnp.float32)


# --------------------------------------------------------------------------
# One-time parameter preparation: fold BN (f32), transpose, split, pad, bf16.
# --------------------------------------------------------------------------
def prepare_params(p):
    D = p["wt"].shape[1]      # projection_dim
    L = p["wt"].shape[0]      # linear_injection
    C = p["wc"].shape[0]      # label_size
    Dp = _round_up(D, LANE)
    Lp = _round_up(L, LANE)
    Cp = _round_up(C, LANE)

    def fold(w, b, g, beta, mean, var):
        # y = ((x @ W^T + b) - mean) * g / sqrt(var+eps) + beta
        #   = x @ (W * s[:,None])^T + ((b - mean) * s + beta),  s = g*rsqrt(var+eps)
        s = g * jax.lax.rsqrt(var + BN_EPS)            # (L,)
        wf = (w * s[:, None]).T                        # (D, L)   x @ wf
        bf = (b - mean) * s + beta                     # (L,)
        # zero-padded rows/cols keep the math exact (LeakyReLU(0) = 0)
        wf = jnp.pad(wf, ((0, Dp - D), (0, Lp - L)))
        bf = jnp.pad(bf, ((0, Lp - L),)).reshape(1, Lp)
        return wf.astype(jnp.bfloat16), bf.astype(jnp.float32)

    wt, bt = fold(p["wt"], p["bt"], p["gt"], p["bet"], p["mt"], p["vt"])
    wv, bv = fold(p["wv"], p["bv"], p["gv"], p["bev"], p["mv"], p["vv"])

    # classifier split into textual / visual halves, transposed to (Lp, Cp).
    wct = jnp.pad(p["wc"][:, :L].T, ((0, Lp - L), (0, Cp - C))).astype(jnp.bfloat16)
    wcv = jnp.pad(p["wc"][:, L:].T, ((0, Lp - L), (0, Cp - C))).astype(jnp.bfloat16)
    bc = jnp.pad(p["bc"], ((0, Cp - C),)).reshape(1, Cp).astype(jnp.float32)

    return {"wt": wt, "bt": bt, "wv": wv, "bv": bv,
            "wct": wct, "wcv": wcv, "bc": bc,
            "D": D, "Dp": Dp, "L": L, "C": C}


# --------------------------------------------------------------------------
# Wrapper: batch-tiled grid (no batch padding), weights VMEM-resident.
# --------------------------------------------------------------------------
def clip_head(text_embeds, image_embeds, kp, *, block_b=1024):
    B, D = text_embeds.shape
    Dp = kp["Dp"]
    Cp = kp["bc"].shape[1]
    C = kp["C"]

    # Lane-align the contraction dim only when projection_dim is misaligned
    # (real CLIP dims 512 / 768 are already multiples of 128 -> no copy).
    if D != Dp:
        text_embeds = jnp.pad(text_embeds, ((0, 0), (0, Dp - D)))
        image_embeds = jnp.pad(image_embeds, ((0, 0), (0, Dp - D)))

    # Batch tile: big enough to amortize per-step overhead, no padding of B
    # (Pallas masks the boundary block).  If a single step would cover all of
    # B, halve the tile so v7x's two TensorCores both get grid steps.
    TB = min(block_b, _round_up(B, SUBLANE))
    if pl.cdiv(B, TB) < 2 and TB > SUBLANE:
        TB = _round_up(pl.cdiv(B, 2), SUBLANE)
    grid = (pl.cdiv(B, TB),)

    act_spec = pl.BlockSpec((TB, Dp), lambda i: (i, 0))
    out_spec = pl.BlockSpec((TB, Cp), lambda i: (i, 0))

    def resident(arr):
        # constant block index -> stays in VMEM, never re-DMAed across steps
        return pl.BlockSpec(arr.shape, lambda i: (0, 0))

    logits = pl.pallas_call(
        clip_head_kernel,
        out_shape=jax.ShapeDtypeStruct((B, Cp), jnp.float32),
        grid=grid,
        in_specs=[
            act_spec, act_spec,
            resident(kp["wt"]), resident(kp["bt"]),
            resident(kp["wv"]), resident(kp["bv"]),
            resident(kp["wct"]), resident(kp["wcv"]),
            resident(kp["bc"]),
        ],
        out_specs=out_spec,
        compiler_params=pltpu.CompilerParams(
            dimension_semantics=("parallel",),
            # covers block_b up to ~2048 in f32 inputs; < v7x's 64 MiB physical,
            # raises v5e's 16 MiB scoped default.
            vmem_limit_bytes=48 * 1024 * 1024),
    )(text_embeds, image_embeds,
      kp["wt"], kp["bt"], kp["wv"], kp["bv"],
      kp["wct"], kp["wcv"], kp["bc"])

    return logits[:, :C]


# --------------------------------------------------------------------------
# Raw (un-fused) parameters, matching the PyTorch module layout.
# --------------------------------------------------------------------------
def init_params(key, projection_dim, linear_injection, label_size):
    ks = jax.random.split(key, 8)
    D, L, C = projection_dim, linear_injection, label_size
    return {
        # textual_linear.linear
        "wt": jax.random.normal(ks[0], (L, D), jnp.float32) * 0.05,
        "bt": jax.random.normal(ks[1], (L,), jnp.float32) * 0.05,
        # textual_linear.layerNorm (BatchNorm1d, eval running stats)
        "gt": jnp.ones((L,), jnp.float32),
        "bet": jnp.zeros((L,), jnp.float32),
        "mt": jax.random.normal(ks[2], (L,), jnp.float32) * 0.01,
        "vt": jnp.ones((L,), jnp.float32) * 0.9,
        # visual_linear.linear
        "wv": jax.random.normal(ks[3], (L, D), jnp.float32) * 0.05,
        "bv": jax.random.normal(ks[4], (L,), jnp.float32) * 0.05,
        # visual_linear.layerNorm
        "gv": jnp.ones((L,), jnp.float32),
        "bev": jnp.zeros((L,), jnp.float32),
        "mv": jax.random.normal(ks[5], (L,), jnp.float32) * 0.01,
        "vv": jnp.ones((L,), jnp.float32) * 1.1,
        # classifier
        "wc": jax.random.normal(ks[6], (C, 2 * L), jnp.float32) * 0.05,
        "bc": jax.random.normal(ks[7], (C,), jnp.float32) * 0.05,
    }


def reference(text_embeds, image_embeds, p):
    def branch(x, w, b, g, be, m, v):
        y = x @ w.T + b
        y = (y - m) / jnp.sqrt(v + BN_EPS) * g + be
        return jnp.where(y >= 0.0, y, LEAKY_SLOPE * y)

    t = branch(text_embeds, p["wt"], p["bt"], p["gt"], p["bet"], p["mt"], p["vt"])
    v = branch(image_embeds, p["wv"], p["bv"], p["gv"], p["bev"], p["mv"], p["vv"])
    return jnp.concatenate([t, v], axis=-1) @ p["wc"].T + p["bc"]


if __name__ == "__main__":
    # TODO(synk): the pretrained CLIP backbone (AutoModel) has no clean Pallas
    # equivalent; text_embeds / image_embeds are taken as kernel inputs instead.
    B, D, L, C = 2, 32, 32, 4   # batch, projection_dim, linear_injection, label_size

    key = jax.random.PRNGKey(0)
    k_text, k_img, k_param = jax.random.split(key, 3)
    text_embeds = jax.random.normal(k_text, (B, D), jnp.float32)
    image_embeds = jax.random.normal(k_img, (B, D), jnp.float32)
    params = init_params(k_param, D, L, C)

    # One-time fold / transpose / pad / bf16 cast (done at model-load time).
    kernel_params = prepare_params(params)
    kernel_params = jax.tree_util.tree_map(
        lambda x: jax.block_until_ready(x) if isinstance(x, jax.Array) else x,
        kernel_params)

    logits = clip_head(text_embeds, image_embeds, kernel_params)
    logits = jax.block_until_ready(logits)

    ref = reference(text_embeds, image_embeds, params)
    assert logits.shape == (B, C)
    # bf16 weights/activations on the MXU: loosen tolerance vs the f32 reference.
    assert jnp.allclose(logits, ref, atol=2e-2, rtol=2e-2), (
        f"max abs err {jnp.max(jnp.abs(logits - ref))}")

    print("KERNEL_OK")
</pallas_src>

<mosaic_0001>
module attributes {stable_mosaic.version = 11 : i64} {
  func.func @clip_head_kernel(%arg0: i32, %arg1: memref<8x128xf32, #tpu.memory_space<vmem>>, %arg2: memref<8x128xf32, #tpu.memory_space<vmem>>, %arg3: memref<128x128xbf16, #tpu.memory_space<vmem>>, %arg4: memref<1x128xf32, #tpu.memory_space<vmem>>, %arg5: memref<128x128xbf16, #tpu.memory_space<vmem>>, %arg6: memref<1x128xf32, #tpu.memory_space<vmem>>, %arg7: memref<128x128xbf16, #tpu.memory_space<vmem>>, %arg8: memref<128x128xbf16, #tpu.memory_space<vmem>>, %arg9: memref<1x128xf32, #tpu.memory_space<vmem>>, %arg10: memref<8x128xf32, #tpu.memory_space<vmem>>) attributes {dimension_semantics = [#tpu.dimension_semantics<parallel>], iteration_bounds = array<i64: 1>, scalar_prefetch = 0 : i64, scratch_operands = 0 : i64, tpu.core_type = #tpu.core_type<tc>, window_params = [{transform_indices = @transform_0, window_bounds = array<i64: 8, 128>}, {transform_indices = @transform_1, window_bounds = array<i64: 8, 128>}, {pipeline_mode = #tpu.pipeline_mode<synchronous>, transform_indices = @transform_2, window_bounds = array<i64: 128, 128>}, {pipeline_mode = #tpu.pipeline_mode<synchronous>, transform_indices = @transform_3, window_bounds = array<i64: 1, 128>}, {pipeline_mode = #tpu.pipeline_mode<synchronous>, transform_indices = @transform_4, window_bounds = array<i64: 128, 128>}, {pipeline_mode = #tpu.pipeline_mode<synchronous>, transform_indices = @transform_5, window_bounds = array<i64: 1, 128>}, {pipeline_mode = #tpu.pipeline_mode<synchronous>, transform_indices = @transform_6, window_bounds = array<i64: 128, 128>}, {pipeline_mode = #tpu.pipeline_mode<synchronous>, transform_indices = @transform_7, window_bounds = array<i64: 128, 128>}, {pipeline_mode = #tpu.pipeline_mode<synchronous>, transform_indices = @transform_8, window_bounds = array<i64: 1, 128>}, {transform_indices = @transform_9, window_bounds = array<i64: 8, 128>}]} {
    %c0 = arith.constant 0 : index
    %c0_0 = arith.constant 0 : index
    %0 = vector.load %arg1[%c0, %c0_0] : memref<8x128xf32, #tpu.memory_space<vmem>>, vector<8x128xf32>
    %1 = arith.truncf %0 : vector<8x128xf32> to vector<8x128xbf16>
    %c0_1 = arith.constant 0 : index
    %c0_2 = arith.constant 0 : index
    %2 = vector.load %arg3[%c0_1, %c0_2] : memref<128x128xbf16, #tpu.memory_space<vmem>>, vector<128x128xbf16>
    %cst = arith.constant dense<0.000000e+00> : vector<8x128xf32>
    %3 = tpu.matmul %1, %2, %cst {dimension_numbers = #tpu.dot_dimension_numbers<[1], [0], [0], [1], [0, 0, 1, 1], [], []>} : vector<8x128xbf16>, vector<128x128xbf16>, vector<8x128xf32> -> vector<8x128xf32>
    %c0_3 = arith.constant 0 : index
    %c0_4 = arith.constant 0 : index
    %4 = vector.load %arg4[%c0_3, %c0_4] : memref<1x128xf32, #tpu.memory_space<vmem>>, vector<1x128xf32>
    %5 = vector.broadcast %4 : vector<1x128xf32> to vector<8x128xf32>
    %6 = arith.addf %3, %5 : vector<8x128xf32>
    %cst_5 = arith.constant 2.000000e-01 : f32
    %7 = vector.broadcast %cst_5 : f32 to vector<8x128xf32>
    %8 = arith.mulf %7, %6 : vector<8x128xf32>
    %9 = arith.maximumf %6, %8 : vector<8x128xf32>
    %10 = arith.truncf %9 : vector<8x128xf32> to vector<8x128xbf16>
    %c0_6 = arith.constant 0 : index
    %c0_7 = arith.constant 0 : index
    %11 = vector.load %arg7[%c0_6, %c0_7] : memref<128x128xbf16, #tpu.memory_space<vmem>>, vector<128x128xbf16>
    %cst_8 = arith.constant dense<0.000000e+00> : vector<8x128xf32>
    %12 = tpu.matmul %10, %11, %cst_8 {dimension_numbers = #tpu.dot_dimension_numbers<[1], [0], [0], [1], [0, 0, 1, 1], [], []>} : vector<8x128xbf16>, vector<128x128xbf16>, vector<8x128xf32> -> vector<8x128xf32>
    %c0_9 = arith.constant 0 : index
    %c0_10 = arith.constant 0 : index
    %13 = vector.load %arg9[%c0_9, %c0_10] : memref<1x128xf32, #tpu.memory_space<vmem>>, vector<1x128xf32>
    %14 = vector.broadcast %13 : vector<1x128xf32> to vector<8x128xf32>
    %15 = arith.addf %12, %14 : vector<8x128xf32>
    %c0_11 = arith.constant 0 : index
    %c0_12 = arith.constant 0 : index
    %16 = vector.load %arg2[%c0_11, %c0_12] : memref<8x128xf32, #tpu.memory_space<vmem>>, vector<8x128xf32>
    %17 = arith.truncf %16 : vector<8x128xf32> to vector<8x128xbf16>
    %c0_13 = arith.constant 0 : index
    %c0_14 = arith.constant 0 : index
    %18 = vector.load %arg5[%c0_13, %c0_14] : memref<128x128xbf16, #tpu.memory_space<vmem>>, vector<128x128xbf16>
    %cst_15 = arith.constant dense<0.000000e+00> : vector<8x128xf32>
    %19 = tpu.matmul %17, %18, %cst_15 {dimension_numbers = #tpu.dot_dimension_numbers<[1], [0], [0], [1], [0, 0, 1, 1], [], []>} : vector<8x128xbf16>, vector<128x128xbf16>, vector<8x128xf32> -> vector<8x128xf32>
    %c0_16 = arith.constant 0 : index
    %c0_17 = arith.constant 0 : index
    %20 = vector.load %arg6[%c0_16, %c0_17] : memref<1x128xf32, #tpu.memory_space<vmem>>, vector<1x128xf32>
    %21 = vector.broadcast %20 : vector<1x128xf32> to vector<8x128xf32>
    %22 = arith.addf %19, %21 : vector<8x128xf32>
    %cst_18 = arith.constant 2.000000e-01 : f32
    %23 = vector.broadcast %cst_18 : f32 to vector<8x128xf32>
    %24 = arith.mulf %23, %22 : vector<8x128xf32>
    %25 = arith.maximumf %22, %24 : vector<8x128xf32>
    %26 = arith.truncf %25 : vector<8x128xf32> to vector<8x128xbf16>
    %c0_19 = arith.constant 0 : index
    %c0_20 = arith.constant 0 : index
    %27 = vector.load %arg8[%c0_19, %c0_20] : memref<128x128xbf16, #tpu.memory_space<vmem>>, vector<128x128xbf16>
    %cst_21 = arith.constant dense<0.000000e+00> : vector<8x128xf32>
    %28 = tpu.matmul %26, %27, %cst_21 {dimension_numbers = #tpu.dot_dimension_numbers<[1], [0], [0], [1], [0, 0, 1, 1], [], []>} : vector<8x128xbf16>, vector<128x128xbf16>, vector<8x128xf32> -> vector<8x128xf32>
    %29 = arith.addf %15, %28 : vector<8x128xf32>
    %c0_22 = arith.constant 0 : index
    %c0_23 = arith.constant 0 : index
    %30 = vector.load %arg10[%c0_22, %c0_23] : memref<8x128xf32, #tpu.memory_space<vmem>>, vector<8x128xf32>
    tpu.vector_store %arg10[%c0_22, %c0_23], %29 {strides = array<i32>} : memref<8x128xf32, #tpu.memory_space<vmem>>, vector<8x128xf32>,
    return
  }
  func.func @transform_0(%arg0: i32) -> (i32, i32) {
    %c0_i32 = arith.constant 0 : i32
    %c0_i32_0 = arith.constant 0 : i32
    return %arg0, %c0_i32 : i32, i32
  }
  func.func @transform_1(%arg0: i32) -> (i32, i32) {
    %c0_i32 = arith.constant 0 : i32
    %c0_i32_0 = arith.constant 0 : i32
    return %arg0, %c0_i32 : i32, i32
  }
  func.func @transform_2(%arg0: i32) -> (i32, i32) {
    %c0_i32 = arith.constant 0 : i32
    %c0_i32_0 = arith.constant 0 : i32
    %c0_i32_1 = arith.constant 0 : i32
    return %c0_i32, %c0_i32_0 : i32, i32
  }
  func.func @transform_3(%arg0: i32) -> (i32, i32) {
    %c0_i32 = arith.constant 0 : i32
    %c0_i32_0 = arith.constant 0 : i32
    %c0_i32_1 = arith.constant 0 : i32
    return %c0_i32, %c0_i32_0 : i32, i32
  }
  func.func @transform_4(%arg0: i32) -> (i32, i32) {
    %c0_i32 = arith.constant 0 : i32
    %c0_i32_0 = arith.constant 0 : i32
    %c0_i32_1 = arith.constant 0 : i32
    return %c0_i32, %c0_i32_0 : i32, i32
  }
  func.func @transform_5(%arg0: i32) -> (i32, i32) {
    %c0_i32 = arith.constant 0 : i32
    %c0_i32_0 = arith.constant 0 : i32
    %c0_i32_1 = arith.constant 0 : i32
    return %c0_i32, %c0_i32_0 : i32, i32
  }
  func.func @transform_6(%arg0: i32) -> (i32, i32) {
    %c0_i32 = arith.constant 0 : i32
    %c0_i32_0 = arith.constant 0 : i32
    %c0_i32_1 = arith.constant 0 : i32
    return %c0_i32, %c0_i32_0 : i32, i32
  }
  func.func @transform_7(%arg0: i32) -> (i32, i32) {
    %c0_i32 = arith.constant 0 : i32
    %c0_i32_0 = arith.constant 0 : i32
    %c0_i32_1 = arith.constant 0 : i32
    return %c0_i32, %c0_i32_0 : i32, i32
  }
  func.func @transform_8(%arg0: i32) -> (i32, i32) {
    %c0_i32 = arith.constant 0 : i32
    %c0_i32_0 = arith.constant 0 : i32
    %c0_i32_1 = arith.constant 0 : i32
    return %c0_i32, %c0_i32_0 : i32, i32
  }
  func.func @transform_9(%arg0: i32) -> (i32, i32) {
    %c0_i32 = arith.constant 0 : i32
    %c0_i32_0 = arith.constant 0 : i32
    return %arg0, %c0_i32 : i32, i32
  }
}

</mosaic_0001>

<bundles_post_ra>
// kernel: tpu_custom_call.1
= control target key start
LH: loop header
LB: loop body
LE: loop exit
PB: predicated region body
PF: predicated region fallthrough
CT: control target
= control target key end

     0   :  { %14 = vsyncpa [#allocation3], 0  ;;  %s1114_s0 = inlined_call_operand.hbm [shape: f32[2,128], index: 0, kind: input, shape index: {}]   ;;  %s1115_s1 = inlined_call_operand.vmem [shape: f32[2,128], index: 1, kind: input, shape index: {}]   ;;  %s1116_s2 = inlined_call_operand.hbm [shape: bf16[128,128], index: 2, kind: input, shape index: {}]   ;;  %s1117_s3 = inlined_call_operand.vmem [shape: f32[1,128], index: 3, kind: input, shape index: {}]   ;;  %s1118_s4 = inlined_call_operand.hbm [shape: bf16[128,128], index: 4, kind: input, shape index: {}]   ;;  %s1119_s5 = inlined_call_operand.vmem [shape: f32[1,128], index: 5, kind: input, shape index: {}]   ;;  %s1120_s6 = inlined_call_operand.hbm [shape: bf16[128,128], index: 6, kind: input, shape index: {}]   ;;  %s1121_s7 = inlined_call_operand.hbm [shape: bf16[128,128], index: 7, kind: input, shape index: {}]   ;;  %s1122_s8 = inlined_call_operand.vmem [shape: f32[1,128], index: 8, kind: input, shape index: {}]   ;;  %s1123_s9 = inlined_call_operand.hbm [shape: f32[2,128], index: 9, kind: output, shape index: {}]  }
   0x1   :  { %15 = vsyncpa [#allocation6], 0 }
   0x2   :  { %16 = vsyncpa [#allocation9], 0 }
   0x3   :  { %17 = vsyncpa [#allocation4], 0 }
   0x4   :  { %22 = vsyncadd [#allocation3], 96  ;;  %s910_s30 = smov [#allocation5]   ;;  %s770_s13 = scalar_lea.hbm %s1116_s2, 1024 }
   0x5   :  { %s37_s10 = sshll.u32 %s910_s30, 4  ;;  %p771_p0 = scmp.ne.s32.totalorder %s1116_s2, %s770_s13  ;;  %s38_s10 = int_to_ptr.vmem [resolvable:$true] %s37_s10 }
   0x6   :  { %p774_p1 = scmp.lt.u32.totalorder %s770_s13, %s1116_s2 }
   0x8   :  { %p776_p2 = pnand %p774_p1, %p771_p0 }
   0xa   :  { %779 = shalt.err (!%p776_p2)
}
   0xb   :  { %s780_s18 = scalar_lea.vmem %s38_s10, 1024  ;;  %p785_p4 = scmp.lt.s32.totalorder %s38_s10, %s38_s10 }
   0xc   :  { %p781_p3 = scmp.ne.s32.totalorder %s38_s10, %s780_s18  ;;  %p786_p5 = scmp.lt.s32.totalorder %s780_s18, %s780_s18 }
   0xe   :  { %p787_p6 = por %p786_p5, %p785_p4 }
  0x10   :  { %p788_p7 = pnand %p787_p6, %p781_p3 }
  0x12   :  { %791 = shalt.err (!%p788_p7)
}
  0x13   :  { %s911_s19 = smov 64   ;;  %s912_s20 = smov 4  }
  0x14   :  { %43 = dma.hbm_to_vmem [thread:$0]  %s1116_s2, 1024, %s38_s10, [#allocation6], %s911_s19, %s911_s19, %s912_s20  }
  0x15   :  { %s913_s23 = smov [#allocation8]   ;;  %s914_s25 = smov [#allocation2]  }
  0x16   :  { %s65_s24 = sshll.u32 %s913_s23, 4  ;;  %s23_s26 = sshll.u32 %s914_s25, 4  ;;  %s66_s24 = int_to_ptr.vmem [resolvable:$true] %s65_s24  ;;  %s24_s26 = int_to_ptr.vmem [resolvable:$true] %s23_s26 }
  0x17   :  { %s792_s29 = scalar_lea.hbm %s1120_s6, 1024 }
  0x18   :  { %p793_p8 = scmp.ne.s32.totalorder %s1120_s6, %s792_s29  ;;  %p796_p9 = scmp.lt.u32.totalorder %s792_s29, %s1120_s6 }
  0x1a   :  { %p798_p10 = pnand %p796_p9, %p793_p8 }
  0x1c   :  { %801 = shalt.err (!%p798_p10)
}
  0x1d   :  { %s802_s2 = scalar_lea.vmem %s66_s24, 1024  ;;  %p807_p12 = scmp.lt.s32.totalorder %s66_s24, %s66_s24 }
  0x1e   :  { %p803_p11 = scmp.ne.s32.totalorder %s66_s24, %s802_s2  ;;  %p808_p13 = scmp.lt.s32.totalorder %s802_s2, %s802_s2 }
  0x20   :  { %p809_p0 = por %p808_p13, %p807_p12 }
  0x22   :  { %p810_p1 = pnand %p809_p0, %p803_p11 }
  0x24   :  { %813 = shalt.err (!%p810_p1)
}
  0x25   :  { %71 = dma.hbm_to_vmem [thread:$0]  %s1120_s6, 1024, %s66_s24, [#allocation9], %s911_s19, %s911_s19, %s912_s20  }
  0x26   :  { %s814_s17 = scalar_lea.hbm %s1114_s0, 32 }
  0x27   :  { %p815_p2 = scmp.ne.s32.totalorder %s1114_s0, %s814_s17  ;;  %p818_p3 = scmp.lt.u32.totalorder %s814_s17, %s1114_s0 }
  0x29   :  { %p820_p4 = pnand %p818_p3, %p815_p2 }
  0x2b   :  { %823 = shalt.err (!%p820_p4)
}
  0x2c   :  { %s824_s25 = scalar_lea.vmem %s24_s26, 32  ;;  %s828_s27 = scalar_lea.vmem %s24_s26, 128 }
  0x2d   :  { %p825_p5 = scmp.ne.s32.totalorder %s24_s26, %s824_s25  ;;  %p829_p6 = scmp.lt.s32.totalorder %s24_s26, %s24_s26 }
  0x2e   :  { %p830_p7 = scmp.lt.s32.totalorder %s828_s27, %s824_s25 }
  0x30   :  { %p831_p8 = por %p830_p7, %p829_p6 }
  0x32   :  { %p832_p9 = pnand %p831_p8, %p825_p5 }
  0x34   :  { %835 = shalt.err (!%p832_p9)
}
  0x35   :  { %s915_s6 = smov 32   ;;  %s916_s24 = smov 2  }
  0x36   :  { %29 = dma.hbm_to_vmem [thread:$0]  %s1114_s0, 32, %s24_s26, [#allocation3], %s915_s6, %s915_s6, %s916_s24  }
  0x37   :  { %s917_s30 = smov [#allocation7]   ;;  %s918_s12 = smov [#allocation10]  }
  0x38   :  { %s51_s11 = sshll.u32 %s917_s30, 4  ;;  %s77_s13 = sshll.u32 %s918_s12, 4  ;;  %s52_s11 = int_to_ptr.vmem [resolvable:$true] %s51_s11  ;;  %s78_s13 = int_to_ptr.vmem [resolvable:$true] %s77_s13 }
  0x39   :  { %s836_s14 = scalar_lea.hbm %s1118_s4, 1024 }
  0x3a   :  { %p837_p10 = scmp.ne.s32.totalorder %s1118_s4, %s836_s14  ;;  %p840_p11 = scmp.lt.u32.totalorder %s836_s14, %s1118_s4 }
  0x3c   :  { %p842_p12 = pnand %p840_p11, %p837_p10 }
  0x3e   :  { %845 = shalt.err (!%p842_p12)
}
  0x3f   :  { %s846_s0 = scalar_lea.vmem %s52_s11, 1024  ;;  %p851_p0 = scmp.lt.s32.totalorder %s52_s11, %s52_s11 }
  0x40   :  { %p847_p13 = scmp.ne.s32.totalorder %s52_s11, %s846_s0  ;;  %p852_p1 = scmp.lt.s32.totalorder %s846_s0, %s846_s0 }
  0x42   :  { %p853_p2 = por %p852_p1, %p851_p0 }
  0x44   :  { %p854_p3 = pnand %p853_p2, %p847_p13 }
  0x46   :  { %857 = shalt.err (!%p854_p3)
}
  0x47   :  { %57 = dma.hbm_to_vmem [thread:$0]  %s1118_s4, 1024, %s52_s11, [#allocation6], %s911_s19, %s911_s19, %s912_s20  }
  0x48   :  { %s858_s25 = scalar_lea.hbm %s1121_s7, 1024 }
  0x49   :  { %p859_p4 = scmp.ne.s32.totalorder %s1121_s7, %s858_s25  ;;  %p862_p5 = scmp.lt.u32.totalorder %s858_s25, %s1121_s7 }
  0x4b   :  { %p864_p6 = pnand %p862_p5, %p859_p4 }
  0x4d   :  { %867 = shalt.err (!%p864_p6)
}
  0x4e   :  { %s868_s12 = scalar_lea.vmem %s78_s13, 1024  ;;  %p873_p8 = scmp.lt.s32.totalorder %s78_s13, %s78_s13 }
  0x4f   :  { %p869_p7 = scmp.ne.s32.totalorder %s78_s13, %s868_s12  ;;  %p874_p9 = scmp.lt.s32.totalorder %s868_s12, %s868_s12 }
  0x51   :  { %p875_p10 = por %p874_p9, %p873_p8 }
  0x53   :  { %p876_p11 = pnand %p875_p10, %p869_p7 }
  0x55   :  { %879 = shalt.err (!%p876_p11)
}
  0x56   :  { %83 = dma.hbm_to_vmem [thread:$0]  %s1121_s7, 1024, %s78_s13, [#allocation9], %s911_s19, %s911_s19, %s912_s20  }
  0x57   :  { %902 = dma.done.wait [#allocation3], 128  }
  0x58   :  { %903 = vsyncadd [#allocation3], 4294967168 }
  0x59   :  { %904 = dma.done.wait [#allocation6], 2048  }
  0x5a   :  { %905 = vsyncadd [#allocation6], 4294965248 }
  0x5b   :  { %906 = dma.done.wait [#allocation9], 2048  }
  0x5c   :  { %907 = vsyncadd [#allocation9], 4294965248  ;;  %v919_v0 = vmov 0.0   ;;  %vm920_vm0 = vmmov 0   ;;  %v738_v1 = vld [vmem:[#allocation5] sm:$0xff]   ;;  %v739_v2 = vld [vmem:[#allocation5 + $0x8] sm:$0xff]  }
  0x5d   :  { %641 = vmatprep.subr.bf16.mxu0 %v919_v0  ;;  %657 = vmatprep.mubr.msk.bf16.mxu0 %vm920_vm0, %v919_v0  ;;  %v740_v3 = vld [vmem:[#allocation5 + $0x10] sm:$0xff]   ;;  %v741_v4 = vld [vmem:[#allocation5 + $0x18] sm:$0xff]   ;;  %v742_v5 = vld [vmem:[#allocation5 + $0x20] sm:$0xff]  }
  0x5e   :  { %661 = vmatprep.subr.bf16.mxu1 %v919_v0  ;;  %677 = vmatprep.mubr.msk.bf16.mxu1 %vm920_vm0, %v919_v0  ;;  %v754_v6 = vld [vmem:[#allocation8] sm:$0xff]   ;;  %v743_v7 = vld [vmem:[#allocation5 + $0x28] sm:$0xff]   ;;  %v744_v9 = vld [vmem:[#allocation5 + $0x30] sm:$0xff]  }
  0x5f   :  { %642 = vmatpush3.bf16.msra.mxu0 %v738_v1  ;;  %662 = vmatpush3.bf16.msra.mxu1 %v754_v6  ;;  %v755_v8 = vld [vmem:[#allocation8 + $0x8] sm:$0xff]   ;;  %v756_v10 = vld [vmem:[#allocation8 + $0x10] sm:$0xff]   ;;  %v745_v11 = vld [vmem:[#allocation5 + $0x38] sm:$0xff]  }
  0x60   :  { %643 = vmatprep.subr.bf16.mxu0 %v919_v0  ;;  %663 = vmatprep.subr.bf16.mxu1 %v919_v0  ;;  %v102_v12 = vld [vmem:[#allocation2] sm:$0xff]  ;;  %v746_v15 = vld [vmem:[#allocation7] sm:$0xff]   ;;  %v747_v17 = vld [vmem:[#allocation7 + $0x8] sm:$0xff]  }
  0x61   :  { %v757_v13 = vld [vmem:[#allocation8 + $0x18] sm:$0xff]   ;;  %v103_v14 = vpack.c.bf16 %v102_v12, %v102_v12  ;;  %v758_v16 = vld [vmem:[#allocation8 + $0x20] sm:$0xff]   ;;  %v759_v18 = vld [vmem:[#allocation8 + $0x28] sm:$0xff]  }
  0x62   :  { %v748_v19 = vld [vmem:[#allocation7 + $0x10] sm:$0xff]   ;;  %v749_v20 = vld [vmem:[#allocation7 + $0x18] sm:$0xff]   ;;  %v750_v21 = vld [vmem:[#allocation7 + $0x20] sm:$0xff]  }
  0x63   :  { %644 = vmatpush3.bf16.msra.mxu0 %v739_v2  ;;  %664 = vmatpush3.bf16.msra.mxu1 %v755_v8  ;;  %v751_v22 = vld [vmem:[#allocation7 + $0x28] sm:$0xff]   ;;  %v752_v23 = vld [vmem:[#allocation7 + $0x30] sm:$0xff]   ;;  %v753_v24 = vld [vmem:[#allocation7 + $0x38] sm:$0xff]  }
  0x64   :  { %645 = vmatprep.subr.bf16.mxu0 %v919_v0  ;;  %665 = vmatprep.subr.bf16.mxu1 %v919_v0  ;;  %v329_v25 = vld [vmem:[%s1115_s1] sm:$0xff]  ;;  %v760_v27 = vld [vmem:[#allocation8 + $0x30] sm:$0xff]   ;;  %v762_v37 = vld [vmem:[#allocation10] sm:$0xff]  }
  0x65   :  { %v330_v26 = vpack.c.bf16 %v329_v25, %v329_v25  ;;  %v761_v28 = vld [vmem:[#allocation8 + $0x38] sm:$0xff]   ;;  %v763_v39 = vld [vmem:[#allocation10 + $0x8] sm:$0xff]   ;;  %v764_v40 = vld [vmem:[#allocation10 + $0x10] sm:$0xff]  }
  0x66   :  { %v570_v29 = vld [vmem:[%s1117_s3] ss:$0 sm:$0xff]  ;;  %v766_v42 = vld [vmem:[#allocation10 + $0x20] sm:$0xff]   ;;  %v767_v43 = vld [vmem:[#allocation10 + $0x28] sm:$0xff]  }
  0x67   :  { %646 = vmatpush3.bf16.msra.mxu0 %v740_v3  ;;  %666 = vmatpush3.bf16.msra.mxu1 %v756_v10  ;;  %v765_v41 = vld [vmem:[#allocation10 + $0x18] sm:$0xff]   ;;  %v768_v45 = vld [vmem:[#allocation10 + $0x30] sm:$0xff]  }
  0x68   :  { %647 = vmatprep.subr.bf16.mxu0 %v919_v0  ;;  %667 = vmatprep.subr.bf16.mxu1 %v919_v0  ;;  %v588_v44 = vld [vmem:[%s1119_s5] ss:$0 sm:$0xff] }
  0x69   :  { %v769_v50 = vld [vmem:[#allocation10 + $0x38] sm:$0xff]  }
  0x6a   :  { %v579_v55 = vld [vmem:[%s1122_s8] ss:$0 sm:$0xff] }
  0x6b   :  { %648 = vmatpush3.bf16.msra.mxu0 %v741_v4  ;;  %668 = vmatpush3.bf16.msra.mxu1 %v757_v13 }
  0x6c   :  { %649 = vmatprep.subr.bf16.mxu0 %v919_v0  ;;  %669 = vmatprep.subr.bf16.mxu1 %v919_v0 }
  0x6f   :  { %650 = vmatpush3.bf16.msra.mxu0 %v742_v5  ;;  %670 = vmatpush3.bf16.msra.mxu1 %v758_v16 }
  0x70   :  { %651 = vmatprep.subr.bf16.mxu0 %v919_v0  ;;  %671 = vmatprep.subr.bf16.mxu1 %v919_v0 }
  0x73   :  { %652 = vmatpush3.bf16.msra.mxu0 %v743_v7  ;;  %672 = vmatpush3.bf16.msra.mxu1 %v759_v18 }
  0x74   :  { %653 = vmatprep.subr.bf16.mxu0 %v919_v0  ;;  %673 = vmatprep.subr.bf16.mxu1 %v919_v0 }
  0x77   :  { %654 = vmatpush3.bf16.msra.mxu0 %v744_v9  ;;  %674 = vmatpush3.bf16.msra.mxu1 %v760_v27 }
  0x78   :  { %655 = vmatprep.subr.bf16.mxu0 %v919_v0  ;;  %675 = vmatprep.subr.bf16.mxu1 %v919_v0 }
  0x7b   :  { %656 = vmatpush3.bf16.msra.mxu0 %v745_v11  ;;  %676 = vmatpush3.bf16.msra.mxu1 %v761_v28 }
  0x7c   :  { %681 = vmatprep.subr.bf16.mxu0 %v919_v0  ;;  %701 = vmatprep.subr.bf16.mxu1 %v919_v0 }
  0x7e   :  { %658 = vmatmul.mubr.bf16.vlgmr.msra.gmra.mrb[0].mxu0 %v103_v14 }
  0x7f   :  { %682 = vmatpush3.bf16.msra.mxu0 %v746_v15  ;;  %697 = vmatprep.mubr.msk.bf16.mxu0 %vm920_vm0, %v919_v0 }
  0x80   :  { %683 = vmatprep.subr.bf16.mxu0 %v919_v0 }
  0x83   :  { %684 = vmatpush3.bf16.msra.mxu0 %v747_v17 }
  0x84   :  { %685 = vmatprep.subr.bf16.mxu0 %v919_v0 }
  0x87   :  { %686 = vmatpush3.bf16.msra.mxu0 %v748_v19 }
  0x88   :  { %687 = vmatprep.subr.bf16.mxu0 %v919_v0 }
  0x8b   :  { %688 = vmatpush3.bf16.msra.mxu0 %v749_v20 }
  0x8c   :  { %689 = vmatprep.subr.bf16.mxu0 %v919_v0 }
  0x8f   :  { %690 = vmatpush3.bf16.msra.mxu0 %v750_v21 }
  0x90   :  { %691 = vmatprep.subr.bf16.mxu0 %v919_v0 }
  0x93   :  { %692 = vmatpush3.bf16.msra.mxu0 %v751_v22 }
  0x94   :  { %693 = vmatprep.subr.bf16.mxu0 %v919_v0 }
  0x97   :  { %694 = vmatpush3.bf16.msra.mxu0 %v752_v23 }
  0x98   :  { %695 = vmatprep.subr.bf16.mxu0 %v919_v0 }
  0x9b   :  { %696 = vmatpush3.bf16.msra.mxu0 %v753_v24 }
  0x9e   :  { %698 = vmatmul.mubr.bf16.vlgmr.msra.gmra.mrb[4].mxu0 %v330_v26 }
 0x151   :  { %v209_v30 = vpop.f32.mrb[0].mxu0 }
 0x152   :  { %v210_v31 = vadd.f32 %v570_v29, %v209_v30  ;;  %v659_v32 = vpop.f32.mrb[1].mxu0 }
 0x153   :  { %v212_v33 = vpop.f32.mrb[2].mxu0 }
 0x154   :  { %v215_v34 = vmul.f32 0.2, %v210_v31  ;;  %v660_v35 = vpop.f32.mrb[3].mxu0 }
 0x156   :  { %v216_v36 = vmax.f32 %v210_v31, %v215_v34 }
 0x158   :  { %v217_v38 = vpack.c.bf16 %v216_v36, %v216_v36 }
 0x15a   :  { %678 = vmatmul.mubr.bf16.vlgmr.msra.gmra.mrb[0].mxu1 %v217_v38 }
 0x15b   :  { %702 = vmatpush3.bf16.msra.mxu1 %v762_v37  ;;  %717 = vmatprep.mubr.msk.bf16.mxu1 %vm920_vm0, %v919_v0 }
 0x15c   :  { %703 = vmatprep.subr.bf16.mxu1 %v919_v0 }
 0x15f   :  { %704 = vmatpush3.bf16.msra.mxu1 %v763_v39 }
 0x160   :  { %705 = vmatprep.subr.bf16.mxu1 %v919_v0 }
 0x163   :  { %706 = vmatpush3.bf16.msra.mxu1 %v764_v40 }
 0x164   :  { %707 = vmatprep.subr.bf16.mxu1 %v919_v0 }
 0x167   :  { %708 = vmatpush3.bf16.msra.mxu1 %v765_v41 }
 0x168   :  { %709 = vmatprep.subr.bf16.mxu1 %v919_v0 }
 0x16b   :  { %710 = vmatpush3.bf16.msra.mxu1 %v766_v42 }
 0x16c   :  { %711 = vmatprep.subr.bf16.mxu1 %v919_v0 }
 0x16f   :  { %712 = vmatpush3.bf16.msra.mxu1 %v767_v43 }
 0x170   :  { %713 = vmatprep.subr.bf16.mxu1 %v919_v0 }
 0x171   :  { %v436_v46 = vpop.f32.mrb[4].mxu0 }
 0x172   :  { %v437_v47 = vadd.f32 %v588_v44, %v436_v46  ;;  %v699_v48 = vpop.f32.mrb[5].mxu0 }
 0x173   :  { %v439_v49 = vpop.f32.mrb[6].mxu0  ;;  %714 = vmatpush3.bf16.msra.mxu1 %v768_v45 }
 0x174   :  { %v442_v51 = vmul.f32 0.2, %v437_v47  ;;  %v700_v52 = vpop.f32.mrb[7].mxu0  ;;  %715 = vmatprep.subr.bf16.mxu1 %v919_v0 }
 0x176   :  { %v443_v53 = vmax.f32 %v437_v47, %v442_v51 }
 0x177   :  { %716 = vmatpush3.bf16.msra.mxu1 %v769_v50 }
 0x178   :  { %v444_v54 = vpack.c.bf16 %v443_v53, %v443_v53 }
 0x17a   :  { %718 = vmatmul.mubr.bf16.vlgmr.msra.gmra.mrb[0].mxu1 %v444_v54 }
 0x24d   :  { %v543_v56 = vpop.f32.mrb[0].mxu1 }
 0x24e   :  { %v721_v57 = vadd.f32 %v579_v55, %v543_v56  ;;  %v719_v58 = vpop.f32.mrb[1].mxu1 }
 0x24f   :  { %v546_v59 = vpop.f32.mrb[2].mxu1 }
 0x250   :  { %550 = vst [vmem:[#allocation11] sm:$0xff] %v721_v57  ;;  %v720_v60 = vpop.f32.mrb[3].mxu1 }
 0x251   :  { %555 = vsyncadd [#allocation4], 96  ;;  %s921_s5 = smov [#allocation11]  }
 0x252   :  { %s556_s14 = sshll.u32 %s921_s5, 4  ;;  %s557_s14 = int_to_ptr.vmem [resolvable:$true] %s556_s14 }
 0x253   :  { %s880_s15 = scalar_lea.vmem %s557_s14, 32  ;;  %s884_s16 = scalar_lea.vmem %s557_s14, 128 }
 0x254   :  { %p881_p12 = scmp.ne.s32.totalorder %s557_s14, %s880_s15  ;;  %p885_p13 = scmp.lt.s32.totalorder %s557_s14, %s557_s14 }
 0x255   :  { %p886_p0 = scmp.lt.s32.totalorder %s884_s16, %s880_s15 }
 0x257   :  { %p887_p1 = por %p886_p0, %p885_p13 }
 0x259   :  { %p888_p2 = pnand %p887_p1, %p881_p12 }
 0x25b   :  { %891 = shalt.err (!%p888_p2)
}
 0x25c   :  { %s892_s18 = scalar_lea.hbm %s1123_s9, 32 }
 0x25d   :  { %p893_p3 = scmp.ne.s32.totalorder %s1123_s9, %s892_s18  ;;  %p896_p4 = scmp.lt.u32.totalorder %s892_s18, %s1123_s9 }
 0x25f   :  { %p898_p5 = pnand %p896_p4, %p893_p3 }
 0x261   :  { %901 = shalt.err (!%p898_p5)
}
 0x262   :  { %562 = dma.vmem_to_hbm [thread:$0]  %s557_s14, 32, %s1123_s9, [#allocation4], %s915_s6, %s915_s6, %s916_s24  }
 0x263   :  { %908 = dma.done.wait [#allocation4], 128  }
 0x264   :  { %909 = vsyncadd [#allocation4], 4294967168 }
 0x265   :  { %566 = vsyncpa [#allocation3], 1 }
 0x266   :  { %567 = vsyncpa [#allocation6], 1 }
 0x267   :  { %568 = vsyncpa [#allocation9], 1 }
 0x268   :  { %569 = vsyncpa [#allocation4], 1 }

</bundles_post_ra>
